<compile_context>
chip_gen: v6e
topology: v6e:2x2x1
jax: 0.10.0
libtpu: 0.0.40
codegen_flags: <defaults>
</compile_context>

<pallas_src>
import functools

import jax
import jax.numpy as jnp
from jax import lax
from jax.experimental import pallas as pl
from jax.experimental.pallas import tpu as pltpu


# -----------------------------------------------------------------------------
# In-kernel helpers
# -----------------------------------------------------------------------------
def _ce_sum(logits, labels_col):
    """Sum over the batch of per-row cross-entropy.

    logits:     (B, C) f32 (already loaded from VMEM)
    labels_col: (B, 1) int32 (VMEM block)
    Note: an out-of-range label contributes 0 to 'picked' (torch.gather would
    error); acceptable for well-formed inputs.
    """
    b, c = logits.shape
    m = jnp.max(logits, axis=-1, keepdims=True)
    lse = jnp.log(jnp.sum(jnp.exp(logits - m), axis=-1, keepdims=True)) + m
    col = lax.broadcasted_iota(jnp.int32, (b, c), 1)
    picked = jnp.sum(jnp.where(col == labels_col, logits, 0.0))
    return jnp.sum(lse) - picked


def _nce_loss(f1, f2, *, neg_m, temp, use_bf16):
    """BatchCriterion on x = cat(f1, f2), computed block-wise (no concat)."""
    half, d = f1.shape
    n = 2 * half
    mm_dtype = jnp.bfloat16 if use_bf16 else jnp.float32
    a = f1.astype(mm_dtype)
    b_ = f2.astype(mm_dtype)
    inv_t = jnp.float32(1.0 / temp)
    neg_m_f = jnp.float32(neg_m)
    tiny = jnp.float32(1e-30)  # guards log(<=0); masks degenerate inputs

    def dot_nt(x, y):  # x @ y.T in MXU NT form (no explicit transpose of y)
        return lax.dot_general(
            x, y, (((1,), (1,)), ((), ())), preferred_element_type=jnp.float32
        )

    rr = lax.broadcasted_iota(jnp.int32, (half, half), 0)
    cc = lax.broadcasted_iota(jnp.int32, (half, half), 1)
    diag = rr == cc

    def half_block(s_self, s_cross):
        # Per-row max subtraction: loss only uses ratios e/all_div, so the
        # shift cancels exactly -> identical math, overflow-proof exp.
        m = jnp.maximum(
            jnp.max(s_self, axis=-1, keepdims=True),
            jnp.max(s_cross, axis=-1, keepdims=True),
        )                                                          # (h, 1)
        e_self = jnp.exp(s_self - m)                               # diag -> 0
        e_cross = jnp.exp(s_cross - m)
        pos = jnp.sum(jnp.where(diag, e_cross, 0.0), axis=-1, keepdims=True)
        row_sum = jnp.sum(e_self, axis=-1, keepdims=True) + jnp.sum(
            e_cross, axis=-1, keepdims=True
        )
        if neg_m == 1.0:
            all_div = row_sum
        else:
            all_div = (row_sum - pos) * neg_m_f + pos
        # EUP reciprocal (one per row) + one Newton-Raphson refinement step:
        # keeps the divide off the VPU while restoring ~f32 accuracy.
        inv_div = pl.reciprocal(all_div, approx=True)              # (h, 1)
        inv_div = inv_div * (2.0 - all_div * inv_div)
        ln_pmt = pos * inv_div
        # Half the EUP logs: one log of the per-element product instead of two
        # (factors clamped individually so a stray negative can't flip sign).
        t1 = jnp.maximum(1.0 - e_self * inv_div, tiny)
        t2 = jnp.maximum(1.0 - e_cross * inv_div, tiny)
        ln_pon = jnp.sum(jnp.log(t1 * t2)) - jnp.sum(
            jnp.log(jnp.maximum(1.0 - ln_pmt, tiny))
        )
        ln_pmt_sum = jnp.sum(jnp.log(ln_pmt))
        return ln_pmt_sum, ln_pon

    # ---- stage 1: rows of f1 (positives on diag(f1 f2^T)) ------------------
    s12 = dot_nt(a, b_) * inv_t                                    # kept live
    s11 = dot_nt(a, a) * inv_t
    s11 = jnp.where(diag, -jnp.inf, s11)   # (1 - eye) mask -> exp() == 0
    pmt1, pon1 = half_block(s11, s12)
    # ---- stage 2: rows of f2 (positives on diag(f2 f1^T)) ------------------
    s22 = dot_nt(b_, b_) * inv_t
    s22 = jnp.where(diag, -jnp.inf, s22)
    if d >= 128:
        s21 = s12.T            # exact; saves 25% of Gram MXU work (XLU idle)
    else:
        s21 = dot_nt(b_, a) * inv_t   # tiny shapes: transpose buys nothing
    pmt2, pon2 = half_block(s22, s21)

    return -((pmt1 + pmt2) + neg_m_f * (pon1 + pon2)) / n


# -----------------------------------------------------------------------------
# Fused loss kernel: 2x cross-entropy + MSE + (optional) BatchCriterion NCE
# -----------------------------------------------------------------------------
def _fused_loss_kernel(
    ap_ref,                # VMEM (B, C) f32   anchor predicts
    pp_ref,                # VMEM (B, C) f32   positive predicts
    af_ref,                # VMEM (B, D) f32   anchor features
    pf_ref,                # VMEM (B, D) f32   positive features
    la_ref,                # VMEM (B, 1) int32 anchor labels
    lp_ref,                # VMEM (B, 1) int32 positive labels
    out_ref,               # VMEM (1, 128) f32 lane-padded scalar output
    *,
    neg_m,
    temp,
    compute_nce,
    use_bf16,
    alpha,
    inverse_weight,
):
    b = ap_ref.shape[0]

    # Classification losses (mean CE per head, summed).
    ap = ap_ref[...].astype(jnp.float32)
    pp = pp_ref[...].astype(jnp.float32)
    cls_loss = (_ce_sum(ap, la_ref[...]) + _ce_sum(pp, lp_ref[...])) / b

    # Inverse (MSE) loss.
    af = af_ref[...].astype(jnp.float32)
    pf = pf_ref[...].astype(jnp.float32)
    diff = af - pf
    inverse_loss = jnp.sum(diff * diff) / diff.size

    # NCE (BatchCriterion) loss + final weighting, fused on-chip.
    if compute_nce:
        nce_loss = _nce_loss(af, pf, neg_m=neg_m, temp=temp, use_bf16=use_bf16)
        total = alpha * nce_loss + cls_loss + inverse_loss
    else:
        total = cls_loss + inverse_weight * inverse_loss

    # Single unmasked full-row store (no lane-masked partial stores).
    out_ref[...] = jnp.broadcast_to(total.astype(jnp.float32), out_ref.shape)


def _run_fused_loss(
    anchor_predicts,
    positive_predicts,
    anchor_features,
    positive_features,
    anchor_labels,
    positive_labels,
    *,
    neg_m,
    temp,
    compute_nce,
    use_bf16,
    alpha,
    inverse_weight,
):
    b, c = anchor_predicts.shape
    _, d = anchor_features.shape
    kernel = functools.partial(
        _fused_loss_kernel,
        neg_m=float(neg_m),
        temp=float(temp),
        compute_nce=bool(compute_nce),
        use_bf16=bool(use_bf16),
        alpha=float(alpha),
        inverse_weight=float(inverse_weight),
    )
    out = pl.pallas_call(
        kernel,
        out_shape=jax.ShapeDtypeStruct((1, 128), jnp.float32),
        grid=(1,),
        in_specs=[
            pl.BlockSpec((b, c), lambda i: (0, 0)),
            pl.BlockSpec((b, c), lambda i: (0, 0)),
            pl.BlockSpec((b, d), lambda i: (0, 0)),
            pl.BlockSpec((b, d), lambda i: (0, 0)),
            pl.BlockSpec((b, 1), lambda i: (0, 0)),
            pl.BlockSpec((b, 1), lambda i: (0, 0)),
        ],
        out_specs=pl.BlockSpec((1, 128), lambda i: (0, 0)),
        compiler_params=pltpu.CompilerParams(dimension_semantics=("arbitrary",)),
    )(
        anchor_predicts.astype(jnp.float32),
        positive_predicts.astype(jnp.float32),
        anchor_features.astype(jnp.float32),
        positive_features.astype(jnp.float32),
        anchor_labels.astype(jnp.int32).reshape(b, 1),
        positive_labels.astype(jnp.int32).reshape(b, 1),
    )
    return out[0, 0]


# -----------------------------------------------------------------------------
# TemporalConsistencyTrainLoss.forward
# -----------------------------------------------------------------------------
def temporal_consistency_train_loss(
    anchor_predicts,
    positive_predicts,
    anchor_features,
    positive_features,
    anchor_labels,
    positive_labels,
    *,
    nce=0,
    neg_m=12.0,
    temp=0.1,
    use_bf16_matmul=True,
):
    d = anchor_features.shape[1]
    # bf16 MXU fast path only pays off at training-scale D; at tiny D the
    # pack/cast ops are pure overhead (the contraction pads to the MXU tile).
    use_bf16 = bool(use_bf16_matmul) and d >= 256
    return _run_fused_loss(
        anchor_predicts,
        positive_predicts,
        anchor_features,
        positive_features,
        anchor_labels,
        positive_labels,
        neg_m=neg_m,
        temp=temp,
        compute_nce=bool(nce),
        use_bf16=use_bf16,
        alpha=0.03,
        inverse_weight=10.0,
    )


# -----------------------------------------------------------------------------
# Pure-JAX reference (mirrors the PyTorch module) for validation
# -----------------------------------------------------------------------------
def _reference_loss(ap, pp, af, pf, al, plab, *, nce, neg_m=12.0, temp=0.1):
    def ce(logits, labels):
        lse = jax.nn.logsumexp(logits, axis=-1)
        picked = jnp.take_along_axis(
            logits, labels[:, None].astype(jnp.int32), axis=-1
        )[:, 0]
        return jnp.mean(lse - picked)

    cls_loss = ce(ap, al) + ce(pp, plab)
    inverse_loss = jnp.mean((af - pf) ** 2)
    if not nce:
        return cls_loss + 10.0 * inverse_loss
    x = jnp.concatenate([af, pf], axis=0)
    n = x.shape[0]
    half = n // 2
    reordered = jnp.concatenate([x[half:], x[:half]], axis=0)
    pos = jnp.exp(jnp.sum(x * reordered, axis=1) / temp)
    all_prob = jnp.exp(x @ x.T / temp) * (1.0 - jnp.eye(n))
    if neg_m == 1.0:
        all_div = all_prob.sum(1)
    else:
        all_div = (all_prob.sum(1) - pos) * neg_m + pos
    ln_pmt = pos / all_div
    ln_pon = jnp.log(1.0 - all_prob / all_div[:, None]).sum(1) - jnp.log(1.0 - ln_pmt)
    nce_loss = -(jnp.sum(jnp.log(ln_pmt)) + neg_m * jnp.sum(ln_pon)) / n
    return 0.03 * nce_loss + cls_loss + inverse_loss


if __name__ == "__main__":
    key = jax.random.PRNGKey(0)
    B, C, D = 8, 16, 32  # batch, num classes (predicts), feature dim
    k1, k2, k3, k4, k5, k6 = jax.random.split(key, 6)

    anchor_predicts = jax.random.normal(k1, (B, C), jnp.float32)
    positive_predicts = jax.random.normal(k2, (B, C), jnp.float32)
    # NCE embeddings are L2-normalized in typical use; the kernel is
    # overflow-proof either way thanks to the per-row max-subtraction.
    af = jax.random.normal(k3, (B, D), jnp.float32)
    pf = jax.random.normal(k4, (B, D), jnp.float32)
    anchor_features = af / jnp.linalg.norm(af, axis=-1, keepdims=True)
    positive_features = pf / jnp.linalg.norm(pf, axis=-1, keepdims=True)
    anchor_labels = jax.random.randint(k5, (B,), 0, C, jnp.int32)
    positive_labels = jax.random.randint(k6, (B,), 0, C, jnp.int32)

    loss_nce = temporal_consistency_train_loss(
        anchor_predicts, positive_predicts,
        anchor_features, positive_features,
        anchor_labels, positive_labels,
        nce=1, neg_m=12.0, temp=0.1,
    )
    loss_plain = temporal_consistency_train_loss(
        anchor_predicts, positive_predicts,
        anchor_features, positive_features,
        anchor_labels, positive_labels,
        nce=0,
    )
    jax.block_until_ready((loss_nce, loss_plain))

    ref_nce = _reference_loss(
        anchor_predicts, positive_predicts, anchor_features, positive_features,
        anchor_labels, positive_labels, nce=1, neg_m=12.0, temp=0.1,
    )
    ref_plain = _reference_loss(
        anchor_predicts, positive_predicts, anchor_features, positive_features,
        anchor_labels, positive_labels, nce=0,
    )

    assert bool(jnp.isfinite(loss_nce)) and bool(jnp.isfinite(loss_plain))
    # Both paths are pure f32 at these shapes (bf16 gate off for D < 256) and
    # the approx reciprocal is Newton-refined -> tight tolerances.
    assert jnp.allclose(loss_plain, ref_plain, rtol=1e-4, atol=1e-4), (
        loss_plain, ref_plain)
    assert jnp.allclose(loss_nce, ref_nce, rtol=1e-3, atol=1e-3), (
        loss_nce, ref_nce)
    print("KERNEL_OK")
</pallas_src>

<mosaic_0001>
module attributes {stable_mosaic.version = 11 : i64} {
  func.func @_fused_loss_kernel(%arg0: i32, %arg1: memref<8x16xf32, #tpu.memory_space<vmem>>, %arg2: memref<8x16xf32, #tpu.memory_space<vmem>>, %arg3: memref<8x32xf32, #tpu.memory_space<vmem>>, %arg4: memref<8x32xf32, #tpu.memory_space<vmem>>, %arg5: memref<8x1xi32, #tpu.memory_space<vmem>>, %arg6: memref<8x1xi32, #tpu.memory_space<vmem>>, %arg7: memref<1x128xf32, #tpu.memory_space<vmem>>) attributes {dimension_semantics = [#tpu.dimension_semantics<arbitrary>], iteration_bounds = array<i64: 1>, scalar_prefetch = 0 : i64, scratch_operands = 0 : i64, tpu.core_type = #tpu.core_type<tc>, window_params = [{pipeline_mode = #tpu.pipeline_mode<synchronous>, transform_indices = @transform_0, window_bounds = array<i64: 8, 16>}, {pipeline_mode = #tpu.pipeline_mode<synchronous>, transform_indices = @transform_1, window_bounds = array<i64: 8, 16>}, {pipeline_mode = #tpu.pipeline_mode<synchronous>, transform_indices = @transform_2, window_bounds = array<i64: 8, 32>}, {pipeline_mode = #tpu.pipeline_mode<synchronous>, transform_indices = @transform_3, window_bounds = array<i64: 8, 32>}, {pipeline_mode = #tpu.pipeline_mode<synchronous>, transform_indices = @transform_4, window_bounds = array<i64: 8, 1>}, {pipeline_mode = #tpu.pipeline_mode<synchronous>, transform_indices = @transform_5, window_bounds = array<i64: 8, 1>}, {pipeline_mode = #tpu.pipeline_mode<synchronous>, transform_indices = @transform_6, window_bounds = array<i64: 1, 128>}]} {
    %c0 = arith.constant 0 : index
    %c0_0 = arith.constant 0 : index
    %0 = vector.load %arg1[%c0, %c0_0] : memref<8x16xf32, #tpu.memory_space<vmem>>, vector<8x16xf32>
    %c0_1 = arith.constant 0 : index
    %c0_2 = arith.constant 0 : index
    %1 = vector.load %arg2[%c0_1, %c0_2] : memref<8x16xf32, #tpu.memory_space<vmem>>, vector<8x16xf32>
    %c0_3 = arith.constant 0 : index
    %c0_4 = arith.constant 0 : index
    %2 = vector.load %arg5[%c0_3, %c0_4] : memref<8x1xi32, #tpu.memory_space<vmem>>, vector<8x1xi32>
    %cst = arith.constant dense<0xFF800000> : vector<8xf32>
    %3 = vector.multi_reduction <maximumf>, %0, %cst [1] : vector<8x16xf32> to vector<8xf32>
    %4 = vector.shape_cast %3 : vector<8xf32> to vector<8x1xf32>
    %5 = vector.broadcast %4 : vector<8x1xf32> to vector<8x16xf32>
    %6 = arith.subf %0, %5 : vector<8x16xf32>
    %7 = math.exp %6 : vector<8x16xf32>
    %cst_5 = arith.constant dense<0.000000e+00> : vector<8xf32>
    %8 = vector.multi_reduction <add>, %7, %cst_5 [1] : vector<8x16xf32> to vector<8xf32>
    %9 = vector.shape_cast %8 : vector<8xf32> to vector<8x1xf32>
    %10 = math.log %9 : vector<8x1xf32>
    %11 = arith.addf %10, %4 : vector<8x1xf32>
    %12 = tpu.iota {dimensions = array<i32: 1>} : vector<8x16xi32>
    %13 = vector.broadcast %2 : vector<8x1xi32> to vector<8x16xi32>
    %14 = arith.cmpi eq, %12, %13 : vector<8x16xi32>
    %cst_6 = arith.constant 0.000000e+00 : f32
    %15 = vector.broadcast %cst_6 : f32 to vector<8x16xf32>
    %16 = arith.select %14, %0, %15 : vector<8x16xi1>, vector<8x16xf32>
    %17 = vector.shape_cast %16 : vector<8x16xf32> to vector<1x8x16xf32>
    %cst_7 = arith.constant dense<0.000000e+00> : vector<1xf32>
    %18 = vector.multi_reduction <add>, %17, %cst_7 [1, 2] : vector<1x8x16xf32> to vector<1xf32>
    %19 = vector.shape_cast %18 : vector<1xf32> to vector<1x1x1xf32>
    %20 = vector.extract %19[0, 0, 0] : f32 from vector<1x1x1xf32>
    %21 = vector.shape_cast %11 : vector<8x1xf32> to vector<1x8x1xf32>
    %cst_8 = arith.constant dense<0.000000e+00> : vector<1xf32>
    %22 = vector.multi_reduction <add>, %21, %cst_8 [1, 2] : vector<1x8x1xf32> to vector<1xf32>
    %23 = vector.shape_cast %22 : vector<1xf32> to vector<1x1x1xf32>
    %24 = vector.extract %23[0, 0, 0] : f32 from vector<1x1x1xf32>
    %25 = arith.subf %24, %20 : f32
    %c0_9 = arith.constant 0 : index
    %c0_10 = arith.constant 0 : index
    %26 = vector.load %arg6[%c0_9, %c0_10] : memref<8x1xi32, #tpu.memory_space<vmem>>, vector<8x1xi32>
    %cst_11 = arith.constant dense<0xFF800000> : vector<8xf32>
    %27 = vector.multi_reduction <maximumf>, %1, %cst_11 [1] : vector<8x16xf32> to vector<8xf32>
    %28 = vector.shape_cast %27 : vector<8xf32> to vector<8x1xf32>
    %29 = vector.broadcast %28 : vector<8x1xf32> to vector<8x16xf32>
    %30 = arith.subf %1, %29 : vector<8x16xf32>
    %31 = math.exp %30 : vector<8x16xf32>
    %cst_12 = arith.constant dense<0.000000e+00> : vector<8xf32>
    %32 = vector.multi_reduction <add>, %31, %cst_12 [1] : vector<8x16xf32> to vector<8xf32>
    %33 = vector.shape_cast %32 : vector<8xf32> to vector<8x1xf32>
    %34 = math.log %33 : vector<8x1xf32>
    %35 = arith.addf %34, %28 : vector<8x1xf32>
    %36 = tpu.iota {dimensions = array<i32: 1>} : vector<8x16xi32>
    %37 = vector.broadcast %26 : vector<8x1xi32> to vector<8x16xi32>
    %38 = arith.cmpi eq, %36, %37 : vector<8x16xi32>
    %cst_13 = arith.constant 0.000000e+00 : f32
    %39 = vector.broadcast %cst_13 : f32 to vector<8x16xf32>
    %40 = arith.select %38, %1, %39 : vector<8x16xi1>, vector<8x16xf32>
    %41 = vector.shape_cast %40 : vector<8x16xf32> to vector<1x8x16xf32>
    %cst_14 = arith.constant dense<0.000000e+00> : vector<1xf32>
    %42 = vector.multi_reduction <add>, %41, %cst_14 [1, 2] : vector<1x8x16xf32> to vector<1xf32>
    %43 = vector.shape_cast %42 : vector<1xf32> to vector<1x1x1xf32>
    %44 = vector.extract %43[0, 0, 0] : f32 from vector<1x1x1xf32>
    %45 = vector.shape_cast %35 : vector<8x1xf32> to vector<1x8x1xf32>
    %cst_15 = arith.constant dense<0.000000e+00> : vector<1xf32>
    %46 = vector.multi_reduction <add>, %45, %cst_15 [1, 2] : vector<1x8x1xf32> to vector<1xf32>
    %47 = vector.shape_cast %46 : vector<1xf32> to vector<1x1x1xf32>
    %48 = vector.extract %47[0, 0, 0] : f32 from vector<1x1x1xf32>
    %49 = arith.subf %48, %44 : f32
    %50 = arith.addf %25, %49 : f32
    %cst_16 = arith.constant 8.000000e+00 : f32
    %51 = arith.divf %50, %cst_16 : f32
    %c0_17 = arith.constant 0 : index
    %c0_18 = arith.constant 0 : index
    %52 = vector.load %arg3[%c0_17, %c0_18] : memref<8x32xf32, #tpu.memory_space<vmem>>, vector<8x32xf32>
    %c0_19 = arith.constant 0 : index
    %c0_20 = arith.constant 0 : index
    %53 = vector.load %arg4[%c0_19, %c0_20] : memref<8x32xf32, #tpu.memory_space<vmem>>, vector<8x32xf32>
    %54 = arith.subf %52, %53 : vector<8x32xf32>
    %55 = arith.mulf %54, %54 : vector<8x32xf32>
    %56 = vector.shape_cast %55 : vector<8x32xf32> to vector<1x8x32xf32>
    %cst_21 = arith.constant dense<0.000000e+00> : vector<1xf32>
    %57 = vector.multi_reduction <add>, %56, %cst_21 [1, 2] : vector<1x8x32xf32> to vector<1xf32>
    %58 = vector.shape_cast %57 : vector<1xf32> to vector<1x1x1xf32>
    %59 = vector.extract %58[0, 0, 0] : f32 from vector<1x1x1xf32>
    %cst_22 = arith.constant 2.560000e+02 : f32
    %60 = arith.divf %59, %cst_22 : f32
    %61 = tpu.iota {dimensions = array<i32: 0>} : vector<8x8xi32>
    %62 = tpu.iota {dimensions = array<i32: 1>} : vector<8x8xi32>
    %63 = arith.cmpi eq, %61, %62 : vector<8x8xi32>
    %cst_23 = arith.constant dense<0.000000e+00> : vector<8x8xf32>
    %64 = tpu.matmul %52, %53, %cst_23 {dimension_numbers = #tpu.dot_dimension_numbers<[1], [1], [0], [0], [0, 0, 1, 0], [], []>} : vector<8x32xf32>, vector<8x32xf32>, vector<8x8xf32> -> vector<8x8xf32>
    %cst_24 = arith.constant 1.000000e+01 : f32
    %65 = vector.broadcast %cst_24 : f32 to vector<8x8xf32>
    %66 = arith.mulf %64, %65 : vector<8x8xf32>
    %cst_25 = arith.constant dense<0.000000e+00> : vector<8x8xf32>
    %67 = tpu.matmul %52, %52, %cst_25 {dimension_numbers = #tpu.dot_dimension_numbers<[1], [1], [0], [0], [0, 0, 1, 0], [], []>} : vector<8x32xf32>, vector<8x32xf32>, vector<8x8xf32> -> vector<8x8xf32>
    %cst_26 = arith.constant 1.000000e+01 : f32
    %68 = vector.broadcast %cst_26 : f32 to vector<8x8xf32>
    %69 = arith.mulf %67, %68 : vector<8x8xf32>
    %cst_27 = arith.constant 0xFF800000 : f32
    %70 = vector.broadcast %cst_27 : f32 to vector<8x8xf32>
    %71 = arith.select %63, %70, %69 : vector<8x8xi1>, vector<8x8xf32>
    %cst_28 = arith.constant dense<0xFF800000> : vector<8xf32>
    %72 = vector.multi_reduction <maximumf>, %71, %cst_28 [1] : vector<8x8xf32> to vector<8xf32>
    %73 = vector.shape_cast %72 : vector<8xf32> to vector<8x1xf32>
    %cst_29 = arith.constant dense<0xFF800000> : vector<8xf32>
    %74 = vector.multi_reduction <maximumf>, %66, %cst_29 [1] : vector<8x8xf32> to vector<8xf32>
    %75 = vector.shape_cast %74 : vector<8xf32> to vector<8x1xf32>
    %76 = arith.maximumf %73, %75 : vector<8x1xf32>
    %77 = vector.broadcast %76 : vector<8x1xf32> to vector<8x8xf32>
    %78 = arith.subf %71, %77 : vector<8x8xf32>
    %79 = math.exp %78 : vector<8x8xf32>
    %80 = vector.broadcast %76 : vector<8x1xf32> to vector<8x8xf32>
    %81 = arith.subf %66, %80 : vector<8x8xf32>
    %82 = math.exp %81 : vector<8x8xf32>
    %cst_30 = arith.constant 0.000000e+00 : f32
    %83 = vector.broadcast %cst_30 : f32 to vector<8x8xf32>
    %84 = arith.select %63, %82, %83 : vector<8x8xi1>, vector<8x8xf32>
    %cst_31 = arith.constant dense<0.000000e+00> : vector<8xf32>
    %85 = vector.multi_reduction <add>, %84, %cst_31 [1] : vector<8x8xf32> to vector<8xf32>
    %86 = vector.shape_cast %85 : vector<8xf32> to vector<8x1xf32>
    %cst_32 = arith.constant dense<0.000000e+00> : vector<8xf32>
    %87 = vector.multi_reduction <add>, %79, %cst_32 [1] : vector<8x8xf32> to vector<8xf32>
    %88 = vector.shape_cast %87 : vector<8xf32> to vector<8x1xf32>
    %cst_33 = arith.constant dense<0.000000e+00> : vector<8xf32>
    %89 = vector.multi_reduction <add>, %82, %cst_33 [1] : vector<8x8xf32> to vector<8xf32>
    %90 = vector.shape_cast %89 : vector<8xf32> to vector<8x1xf32>
    %91 = arith.addf %88, %90 : vector<8x1xf32>
    %92 = arith.subf %91, %86 : vector<8x1xf32>
    %cst_34 = arith.constant 1.200000e+01 : f32
    %93 = vector.broadcast %cst_34 : f32 to vector<8x1xf32>
    %94 = arith.mulf %92, %93 : vector<8x1xf32>
    %95 = arith.addf %94, %86 : vector<8x1xf32>
    %96 = tpu.reciprocal %95 {approx = true} : vector<8x1xf32> -> vector<8x1xf32>
    %97 = arith.mulf %95, %96 : vector<8x1xf32>
    %cst_35 = arith.constant 2.000000e+00 : f32
    %98 = vector.broadcast %cst_35 : f32 to vector<8x1xf32>
    %99 = arith.subf %98, %97 : vector<8x1xf32>
    %100 = arith.mulf %96, %99 : vector<8x1xf32>
    %101 = arith.mulf %86, %100 : vector<8x1xf32>
    %102 = vector.broadcast %100 : vector<8x1xf32> to vector<8x8xf32>
    %103 = arith.mulf %79, %102 : vector<8x8xf32>
    %cst_36 = arith.constant 1.000000e+00 : f32
    %104 = vector.broadcast %cst_36 : f32 to vector<8x8xf32>
    %105 = arith.subf %104, %103 : vector<8x8xf32>
    %cst_37 = arith.constant 1.000000e-30 : f32
    %106 = vector.broadcast %cst_37 : f32 to vector<8x8xf32>
    %107 = arith.maximumf %105, %106 : vector<8x8xf32>
    %108 = vector.broadcast %100 : vector<8x1xf32> to vector<8x8xf32>
    %109 = arith.mulf %82, %108 : vector<8x8xf32>
    %cst_38 = arith.constant 1.000000e+00 : f32
    %110 = vector.broadcast %cst_38 : f32 to vector<8x8xf32>
    %111 = arith.subf %110, %109 : vector<8x8xf32>
    %cst_39 = arith.constant 1.000000e-30 : f32
    %112 = vector.broadcast %cst_39 : f32 to vector<8x8xf32>
    %113 = arith.maximumf %111, %112 : vector<8x8xf32>
    %114 = arith.mulf %107, %113 : vector<8x8xf32>
    %115 = math.log %114 : vector<8x8xf32>
    %116 = vector.shape_cast %115 : vector<8x8xf32> to vector<1x8x8xf32>
    %cst_40 = arith.constant dense<0.000000e+00> : vector<1xf32>
    %117 = vector.multi_reduction <add>, %116, %cst_40 [1, 2] : vector<1x8x8xf32> to vector<1xf32>
    %118 = vector.shape_cast %117 : vector<1xf32> to vector<1x1x1xf32>
    %119 = vector.extract %118[0, 0, 0] : f32 from vector<1x1x1xf32>
    %cst_41 = arith.constant 1.000000e+00 : f32
    %120 = vector.broadcast %cst_41 : f32 to vector<8x1xf32>
    %121 = arith.subf %120, %101 : vector<8x1xf32>
    %cst_42 = arith.constant 1.000000e-30 : f32
    %122 = vector.broadcast %cst_42 : f32 to vector<8x1xf32>
    %123 = arith.maximumf %121, %122 : vector<8x1xf32>
    %124 = math.log %123 : vector<8x1xf32>
    %125 = vector.shape_cast %124 : vector<8x1xf32> to vector<1x8x1xf32>
    %cst_43 = arith.constant dense<0.000000e+00> : vector<1xf32>
    %126 = vector.multi_reduction <add>, %125, %cst_43 [1, 2] : vector<1x8x1xf32> to vector<1xf32>
    %127 = vector.shape_cast %126 : vector<1xf32> to vector<1x1x1xf32>
    %128 = vector.extract %127[0, 0, 0] : f32 from vector<1x1x1xf32>
    %129 = arith.subf %119, %128 : f32
    %130 = math.log %101 : vector<8x1xf32>
    %131 = vector.shape_cast %130 : vector<8x1xf32> to vector<1x8x1xf32>
    %cst_44 = arith.constant dense<0.000000e+00> : vector<1xf32>
    %132 = vector.multi_reduction <add>, %131, %cst_44 [1, 2] : vector<1x8x1xf32> to vector<1xf32>
    %133 = vector.shape_cast %132 : vector<1xf32> to vector<1x1x1xf32>
    %134 = vector.extract %133[0, 0, 0] : f32 from vector<1x1x1xf32>
    %cst_45 = arith.constant dense<0.000000e+00> : vector<8x8xf32>
    %135 = tpu.matmul %53, %53, %cst_45 {dimension_numbers = #tpu.dot_dimension_numbers<[1], [1], [0], [0], [0, 0, 1, 0], [], []>} : vector<8x32xf32>, vector<8x32xf32>, vector<8x8xf32> -> vector<8x8xf32>
    %cst_46 = arith.constant 1.000000e+01 : f32
    %136 = vector.broadcast %cst_46 : f32 to vector<8x8xf32>
    %137 = arith.mulf %135, %136 : vector<8x8xf32>
    %cst_47 = arith.constant 0xFF800000 : f32
    %138 = vector.broadcast %cst_47 : f32 to vector<8x8xf32>
    %139 = arith.select %63, %138, %137 : vector<8x8xi1>, vector<8x8xf32>
    %cst_48 = arith.constant dense<0.000000e+00> : vector<8x8xf32>
    %140 = tpu.matmul %53, %52, %cst_48 {dimension_numbers = #tpu.dot_dimension_numbers<[1], [1], [0], [0], [0, 0, 1, 0], [], []>} : vector<8x32xf32>, vector<8x32xf32>, vector<8x8xf32> -> vector<8x8xf32>
    %cst_49 = arith.constant 1.000000e+01 : f32
    %141 = vector.broadcast %cst_49 : f32 to vector<8x8xf32>
    %142 = arith.mulf %140, %141 : vector<8x8xf32>
    %cst_50 = arith.constant dense<0xFF800000> : vector<8xf32>
    %143 = vector.multi_reduction <maximumf>, %139, %cst_50 [1] : vector<8x8xf32> to vector<8xf32>
    %144 = vector.shape_cast %143 : vector<8xf32> to vector<8x1xf32>
    %cst_51 = arith.constant dense<0xFF800000> : vector<8xf32>
    %145 = vector.multi_reduction <maximumf>, %142, %cst_51 [1] : vector<8x8xf32> to vector<8xf32>
    %146 = vector.shape_cast %145 : vector<8xf32> to vector<8x1xf32>
    %147 = arith.maximumf %144, %146 : vector<8x1xf32>
    %148 = vector.broadcast %147 : vector<8x1xf32> to vector<8x8xf32>
    %149 = arith.subf %139, %148 : vector<8x8xf32>
    %150 = math.exp %149 : vector<8x8xf32>
    %151 = vector.broadcast %147 : vector<8x1xf32> to vector<8x8xf32>
    %152 = arith.subf %142, %151 : vector<8x8xf32>
    %153 = math.exp %152 : vector<8x8xf32>
    %cst_52 = arith.constant 0.000000e+00 : f32
    %154 = vector.broadcast %cst_52 : f32 to vector<8x8xf32>
    %155 = arith.select %63, %153, %154 : vector<8x8xi1>, vector<8x8xf32>
    %cst_53 = arith.constant dense<0.000000e+00> : vector<8xf32>
    %156 = vector.multi_reduction <add>, %155, %cst_53 [1] : vector<8x8xf32> to vector<8xf32>
    %157 = vector.shape_cast %156 : vector<8xf32> to vector<8x1xf32>
    %cst_54 = arith.constant dense<0.000000e+00> : vector<8xf32>
    %158 = vector.multi_reduction <add>, %150, %cst_54 [1] : vector<8x8xf32> to vector<8xf32>
    %159 = vector.shape_cast %158 : vector<8xf32> to vector<8x1xf32>
    %cst_55 = arith.constant dense<0.000000e+00> : vector<8xf32>
    %160 = vector.multi_reduction <add>, %153, %cst_55 [1] : vector<8x8xf32> to vector<8xf32>
    %161 = vector.shape_cast %160 : vector<8xf32> to vector<8x1xf32>
    %162 = arith.addf %159, %161 : vector<8x1xf32>
    %163 = arith.subf %162, %157 : vector<8x1xf32>
    %cst_56 = arith.constant 1.200000e+01 : f32
    %164 = vector.broadcast %cst_56 : f32 to vector<8x1xf32>
    %165 = arith.mulf %163, %164 : vector<8x1xf32>
    %166 = arith.addf %165, %157 : vector<8x1xf32>
    %167 = tpu.reciprocal %166 {approx = true} : vector<8x1xf32> -> vector<8x1xf32>
    %168 = arith.mulf %166, %167 : vector<8x1xf32>
    %cst_57 = arith.constant 2.000000e+00 : f32
    %169 = vector.broadcast %cst_57 : f32 to vector<8x1xf32>
    %170 = arith.subf %169, %168 : vector<8x1xf32>
    %171 = arith.mulf %167, %170 : vector<8x1xf32>
    %172 = arith.mulf %157, %171 : vector<8x1xf32>
    %173 = vector.broadcast %171 : vector<8x1xf32> to vector<8x8xf32>
    %174 = arith.mulf %150, %173 : vector<8x8xf32>
    %cst_58 = arith.constant 1.000000e+00 : f32
    %175 = vector.broadcast %cst_58 : f32 to vector<8x8xf32>
    %176 = arith.subf %175, %174 : vector<8x8xf32>
    %cst_59 = arith.constant 1.000000e-30 : f32
    %177 = vector.broadcast %cst_59 : f32 to vector<8x8xf32>
    %178 = arith.maximumf %176, %177 : vector<8x8xf32>
    %179 = vector.broadcast %171 : vector<8x1xf32> to vector<8x8xf32>
    %180 = arith.mulf %153, %179 : vector<8x8xf32>
    %cst_60 = arith.constant 1.000000e+00 : f32
    %181 = vector.broadcast %cst_60 : f32 to vector<8x8xf32>
    %182 = arith.subf %181, %180 : vector<8x8xf32>
    %cst_61 = arith.constant 1.000000e-30 : f32
    %183 = vector.broadcast %cst_61 : f32 to vector<8x8xf32>
    %184 = arith.maximumf %182, %183 : vector<8x8xf32>
    %185 = arith.mulf %178, %184 : vector<8x8xf32>
    %186 = math.log %185 : vector<8x8xf32>
    %187 = vector.shape_cast %186 : vector<8x8xf32> to vector<1x8x8xf32>
    %cst_62 = arith.constant dense<0.000000e+00> : vector<1xf32>
    %188 = vector.multi_reduction <add>, %187, %cst_62 [1, 2] : vector<1x8x8xf32> to vector<1xf32>
    %189 = vector.shape_cast %188 : vector<1xf32> to vector<1x1x1xf32>
    %190 = vector.extract %189[0, 0, 0] : f32 from vector<1x1x1xf32>
    %cst_63 = arith.constant 1.000000e+00 : f32
    %191 = vector.broadcast %cst_63 : f32 to vector<8x1xf32>
    %192 = arith.subf %191, %172 : vector<8x1xf32>
    %cst_64 = arith.constant 1.000000e-30 : f32
    %193 = vector.broadcast %cst_64 : f32 to vector<8x1xf32>
    %194 = arith.maximumf %192, %193 : vector<8x1xf32>
    %195 = math.log %194 : vector<8x1xf32>
    %196 = vector.shape_cast %195 : vector<8x1xf32> to vector<1x8x1xf32>
    %cst_65 = arith.constant dense<0.000000e+00> : vector<1xf32>
    %197 = vector.multi_reduction <add>, %196, %cst_65 [1, 2] : vector<1x8x1xf32> to vector<1xf32>
    %198 = vector.shape_cast %197 : vector<1xf32> to vector<1x1x1xf32>
    %199 = vector.extract %198[0, 0, 0] : f32 from vector<1x1x1xf32>
    %200 = arith.subf %190, %199 : f32
    %201 = math.log %172 : vector<8x1xf32>
    %202 = vector.shape_cast %201 : vector<8x1xf32> to vector<1x8x1xf32>
    %cst_66 = arith.constant dense<0.000000e+00> : vector<1xf32>
    %203 = vector.multi_reduction <add>, %202, %cst_66 [1, 2] : vector<1x8x1xf32> to vector<1xf32>
    %204 = vector.shape_cast %203 : vector<1xf32> to vector<1x1x1xf32>
    %205 = vector.extract %204[0, 0, 0] : f32 from vector<1x1x1xf32>
    %206 = arith.addf %134, %205 : f32
    %207 = arith.addf %129, %200 : f32
    %cst_67 = arith.constant 1.200000e+01 : f32
    %208 = arith.mulf %cst_67, %207 : f32
    %209 = arith.addf %206, %208 : f32
    %cst_68 = arith.constant 0.000000e+00 : f32
    %210 = arith.subf %cst_68, %209 : f32
    %cst_69 = arith.constant 1.600000e+01 : f32
    %211 = arith.divf %210, %cst_69 : f32
    %cst_70 = arith.constant 3.000000e-02 : f32
    %212 = arith.mulf %cst_70, %211 : f32
    %213 = arith.addf %212, %51 : f32
    %214 = arith.addf %213, %60 : f32
    %215 = vector.broadcast %214 : f32 to vector<1x128xf32>
    %c0_71 = arith.constant 0 : index
    %c0_72 = arith.constant 0 : index
    %216 = vector.load %arg7[%c0_71, %c0_72] : memref<1x128xf32, #tpu.memory_space<vmem>>, vector<1x128xf32>
    tpu.vector_store %arg7[%c0_71, %c0_72], %215 {strides = array<i32>} : memref<1x128xf32, #tpu.memory_space<vmem>>, vector<1x128xf32>,
    return
  }
  func.func @transform_0(%arg0: i32) -> (i32, i32) {
    %c0_i32 = arith.constant 0 : i32
    %c0_i32_0 = arith.constant 0 : i32
    %c0_i32_1 = arith.constant 0 : i32
    return %c0_i32, %c0_i32_0 : i32, i32
  }
  func.func @transform_1(%arg0: i32) -> (i32, i32) {
    %c0_i32 = arith.constant 0 : i32
    %c0_i32_0 = arith.constant 0 : i32
    %c0_i32_1 = arith.constant 0 : i32
    return %c0_i32, %c0_i32_0 : i32, i32
  }
  func.func @transform_2(%arg0: i32) -> (i32, i32) {
    %c0_i32 = arith.constant 0 : i32
    %c0_i32_0 = arith.constant 0 : i32
    %c0_i32_1 = arith.constant 0 : i32
    return %c0_i32, %c0_i32_0 : i32, i32
  }
  func.func @transform_3(%arg0: i32) -> (i32, i32) {
    %c0_i32 = arith.constant 0 : i32
    %c0_i32_0 = arith.constant 0 : i32
    %c0_i32_1 = arith.constant 0 : i32
    return %c0_i32, %c0_i32_0 : i32, i32
  }
  func.func @transform_4(%arg0: i32) -> (i32, i32) {
    %c0_i32 = arith.constant 0 : i32
    %c0_i32_0 = arith.constant 0 : i32
    %c0_i32_1 = arith.constant 0 : i32
    return %c0_i32, %c0_i32_0 : i32, i32
  }
  func.func @transform_5(%arg0: i32) -> (i32, i32) {
    %c0_i32 = arith.constant 0 : i32
    %c0_i32_0 = arith.constant 0 : i32
    %c0_i32_1 = arith.constant 0 : i32
    return %c0_i32, %c0_i32_0 : i32, i32
  }
  func.func @transform_6(%arg0: i32) -> (i32, i32) {
    %c0_i32 = arith.constant 0 : i32
    %c0_i32_0 = arith.constant 0 : i32
    %c0_i32_1 = arith.constant 0 : i32
    return %c0_i32, %c0_i32_0 : i32, i32
  }
}

</mosaic_0001>

<bundles_post_ra>
// kernel: tpu_custom_call.1
= control target key start
LH: loop header
LB: loop body
LE: loop exit
PB: predicated region body
PF: predicated region fallthrough
CT: control target
= control target key end

     0   :  { %11 = vsyncpa [#allocation3], 0  ;;  %s964_s0 = inlined_call_operand.vmem [shape: f32[8,16], index: 0, kind: input, shape index: {}]   ;;  %s965_s1 = inlined_call_operand.vmem [shape: f32[8,16], index: 1, kind: input, shape index: {}]   ;;  %s966_s2 = inlined_call_operand.hbm [shape: f32[8,32], index: 2, kind: input, shape index: {}]   ;;  %s967_s3 = inlined_call_operand.hbm [shape: f32[8,32], index: 3, kind: input, shape index: {}]   ;;  %s968_s4 = inlined_call_operand.vmem [shape: s32[8,1], index: 4, kind: input, shape index: {}]   ;;  %s969_s5 = inlined_call_operand.vmem [shape: s32[8,1], index: 5, kind: input, shape index: {}]   ;;  %s970_s6 = inlined_call_operand.hbm [shape: f32[1,128], index: 6, kind: output, shape index: {}]  }
   0x1   :  { %12 = vsyncpa [#allocation6], 0 }
   0x2   :  { %13 = vsyncpa [#allocation4], 0  ;;  %s799_s21 = smov [#allocation2]   ;;  %s800_s23 = smov [#allocation5]  }
   0x3   :  { %s24_s22 = sshll.u32 %s799_s21, 4  ;;  %s34_s24 = sshll.u32 %s800_s23, 4  ;;  %s25_s22 = int_to_ptr.vmem [resolvable:$true] %s24_s22  ;;  %s35_s24 = int_to_ptr.vmem [resolvable:$true] %s34_s24 }
   0x4   :  { %s741_s25 = scalar_lea.vmem %s25_s22, 128  ;;  %p746_p1 = scmp.lt.s32.totalorder %s25_s22, %s25_s22 }
   0x5   :  { %p742_p0 = scmp.ne.s32.totalorder %s25_s22, %s741_s25  ;;  %p747_p2 = scmp.lt.s32.totalorder %s741_s25, %s741_s25 }
   0x7   :  { %p748_p3 = por %p747_p2, %p746_p1 }
   0x9   :  { %p749_p4 = pnand %p748_p3, %p742_p0 }
   0xb   :  { %752 = shalt.err (!%p749_p4)
}
   0xc   :  { %27 = dma.hbm_to_vmem [thread:$0]  %s966_s2, 128, %s25_s22, [#allocation3]  }
   0xd   :  { %s761_s28 = scalar_lea.vmem %s35_s24, 128  ;;  %p766_p6 = scmp.lt.s32.totalorder %s35_s24, %s35_s24 }
   0xe   :  { %p762_p5 = scmp.ne.s32.totalorder %s35_s24, %s761_s28  ;;  %p767_p7 = scmp.lt.s32.totalorder %s761_s28, %s761_s28 }
  0x10   :  { %p768_p8 = por %p767_p7, %p766_p6 }
  0x12   :  { %p769_p9 = pnand %p768_p8, %p762_p5 }
  0x14   :  { %772 = shalt.err (!%p769_p9)
}
  0x15   :  { %37 = dma.hbm_to_vmem [thread:$0]  %s967_s3, 128, %s35_s24, [#allocation6]  }
  0x16   :  { %793 = dma.done.wait [#allocation3], 128  }
  0x17   :  { %794 = vsyncadd [#allocation3], 4294967168 }
  0x18   :  { %795 = dma.done.wait [#allocation6], 128  }
  0x19   :  { %796 = vsyncadd [#allocation6], 4294967168  ;;  %v801_v0 = vmov 0.0   ;;  %vm802_vm0 = vmmov 0   ;;  %vm140_vm1 = vcmask 261120   ;;  %v846_v1 = vld [vmem:[#allocation5] sm:$0xff]  ;;  %v64_v3 = vlaneseq }
  0x1a   :  { %651 = vmatprep.subr.mxu0 %v801_v0  ;;  %656 = vmatprep.subr.mxu1 %v801_v0  ;;  %v848_v2 = vld [vmem:[#allocation2] sm:$0xff]  ;;  %vm306_vm3 = vcmask 64512   ;;  %vm51_vm4 = vcmask 130048   ;;  %v803_v28 = vmov 0   ;;  %vm81_vm7 = vcmask 7168   ;;  %s804_s7 = smov [#allocation7]  }
  0x1b   :  { %653 = vmatprep.mubr.msk.f32.mxu0 %vm802_vm0, %v801_v0  ;;  %658 = vmatprep.mubr.msk.f32.mxu1 %vm802_vm0, %v801_v0  ;;  %v866_v4 = vand.u32 127, %v64_v3  ;;  %v868_v5 = vshrl.u32 %v64_v3, 7  ;;  %v882_v21 = vld [vmem:[%s964_s0] sm:$0xff]  ;;  %s625_s8 = sshll.u32 %s804_s7, 4  ;;  %s626_s8 = int_to_ptr.vmem [resolvable:$true] %s625_s8 }
  0x1c   :  { %652 = vmatpush3.xpose.msk.msra.mxu0 %vm140_vm1, %v846_v1  ;;  %657 = vmatpush3.xpose.msk.msra.mxu1 %vm140_vm1, %v848_v2  ;;  %v52_v25 = vsel %vm51_vm4, %v882_v21, -inf  ;;  %v892_v26 = vld [vmem:[%s965_s1] sm:$0xff]  ;;  %s773_s10 = scalar_lea.vmem %s626_s8, 16  ;;  %p778_p11 = scmp.lt.s32.totalorder %s626_s8, %s626_s8 }
  0x1d   :  { %661 = vmatprep.subr.mxu0 %v801_v0  ;;  %666 = vmatprep.subr.mxu1 %v801_v0  ;;  %vm156_vm2 = vcmp.eq.s32.totalorder %v868_v5, %v866_v4  ;;  %v94_v27 = vsel %vm51_vm4, %v892_v26, -inf  ;;  %v93_v3 = vld [vmem:[%s969_s5] sm:$0xff]  ;;  %p774_p10 = scmp.ne.s32.totalorder %s626_s8, %s773_s10 }
  0x1e   :  { %699 = vset.pattern.permute.xlu0 %v803_v28  ;;  %700 = vset.pattern.permute.xlu1 %v803_v28  ;;  %v50_v5 = vld [vmem:[%s968_s4] sm:$0xff] }
  0x1f   :  { %654 = vmatmul.mubr.msk.f32.vlgmr.msra.gmra.mxu0 %vm140_vm1, %v848_v2  ;;  %659 = vmatmul.mubr.msk.f32.vlgmr.msra.gmra.mxu1 %vm140_vm1, %v848_v2 }
  0x20   :  { %662 = vmatpush3.xpose.msk.msra.mxu0 %vm140_vm1, %v846_v1  ;;  %663 = vmatprep.mubr.msk.f32.mxu0 %vm802_vm0, %v801_v0 }
  0x21   :  { %667 = vmatpush3.xpose.msk.msra.mxu1 %vm140_vm1, %v848_v2  ;;  %668 = vmatprep.mubr.msk.f32.mxu1 %vm802_vm0, %v801_v0 }
  0x23   :  { %664 = vmatmul.mubr.msk.f32.vlgmr.msra.gmra.mxu0 %vm140_vm1, %v846_v1 }
  0x24   :  { %669 = vmatmul.mubr.msk.f32.vlgmr.msra.gmra.mxu1 %vm140_vm1, %v846_v1 }
  0xdf   :  { %v229_v6 = vpop.f32.mrf.mxu0  ;;  %v300_v7 = vpop.f32.mrf.mxu1 }
  0xe0   :  { %v304_v8 = vmul.f32 10.0, %v300_v7  ;;  %v233_v12 = vmul.f32 10.0, %v229_v6 }
  0xe1   :  { %v655_v9 = vpop.f32.mrf.mxu0  ;;  %v660_v10 = vpop.f32.mrf.mxu1 }
  0xe2   :  { %v305_v11 = vsel %vm156_vm2, -inf, %v304_v8  ;;  %v310_v22 = vsel %vm306_vm3, %v233_v12, -inf }
  0xe3   :  { %v451_v13 = vpop.f32.mrf.mxu0  ;;  %v307_v14 = vsel %vm306_vm3, %v305_v11, -inf }
  0xe4   :  { %v455_v15 = vmul.f32 10.0, %v451_v13  ;;  %308 = vmax.xlane.f32.xlu0 %v307_v14  ;;  %v523_v16 = vpop.f32.mrf.mxu1 }
  0xe5   :  { %v665_v17 = vpop.f32.mrf.mxu0  ;;  %v527_v18 = vmul.f32 10.0, %v523_v16 }
  0xe6   :  { %v456_v19 = vsel %vm156_vm2, -inf, %v455_v15  ;;  %v670_v20 = vpop.f32.mrf.mxu1 }
  0xe7   :  { %v528_v23 = vsel %vm306_vm3, %v456_v19, -inf  ;;  %v531_v24 = vsel %vm306_vm3, %v527_v18, -inf }
  0xe8   :  { %311 = vmax.xlane.f32.xlu0 %v310_v22  ;;  %529 = vmax.xlane.f32.xlu1 %v528_v23 }
  0xec   :  { %532 = vmax.xlane.f32.xlu1 %v531_v24  ;;  %53 = vmax.xlane.f32.xlu0 %v52_v25 }
  0xf0   :  { %95 = vmax.xlane.f32.xlu1 %v94_v27 }
 0x16d   :  { %v309_v29 = vpop.xlane.xlu0 %308 }
 0x171   :  { %v312_v30 = vpop.xlane.xlu0 %311  ;;  %v530_v31 = vpop.xlane.xlu1 %529 }
 0x172   :  { %v313_v32 = vmax.f32 %v309_v29, %v312_v30 }
 0x174   :  { %v314_v33 = vsub.f32 %v305_v11, %v313_v32  ;;  %v317_v34 = vsub.f32 %v233_v12, %v313_v32 }
 0x175   :  { %v533_v35 = vpop.xlane.xlu1 %532  ;;  %v896_v36 = vpop.xlane.xlu0 %53 }
 0x176   :  { %v315_v37 = vmul.f32 1.442695, %v314_v33  ;;  %v318_v38 = vmul.f32 1.442695, %v317_v34  ;;  %v534_v39 = vmax.f32 %v530_v31, %v533_v35  ;;  %v55_v42 = vsub.f32 %v882_v21, %v896_v36 }
 0x177   :  { %v138_v31 = vsub.f32 %v848_v2, %v846_v1 }
 0x178   :  { %701 = vpow2.f32 %v315_v37  ;;  %v535_v40 = vsub.f32 %v456_v19, %v534_v39  ;;  %v538_v41 = vsub.f32 %v527_v18, %v534_v39  ;;  %v56_v47 = vmul.f32 1.442695, %v55_v42 }
 0x179   :  { %703 = vpow2.f32 %v318_v38  ;;  %v900_v43 = vpop.xlane.xlu1 %95  ;;  %v139_v39 = vmul.f32 %v138_v31, %v138_v31 }
 0x17a   :  { %v536_v44 = vmul.f32 1.442695, %v535_v40  ;;  %v539_v45 = vmul.f32 1.442695, %v538_v41  ;;  %v97_v46 = vsub.f32 %v892_v26, %v900_v43 }
 0x17c   :  { %705 = vpow2.f32 %v536_v44  ;;  %v98_v48 = vmul.f32 1.442695, %v97_v46 }
 0x17d   :  { %707 = vpow2.f32 %v539_v45  ;;  %v141_v45 = vsel %vm140_vm1, %v139_v39, 0.0 }
 0x17e   :  { %709 = vpow2.f32 %v56_v47 }
 0x17f   :  { %711 = vpow2.f32 %v98_v48 }
 0x185   :  { %v904_v49 = vpop.eup %701 }
 0x186   :  { %v906_v50 = vpop.eup %703  ;;  %v324_v51 = vsel %vm306_vm3, %v904_v49, 0.0 }
 0x187   :  { %v327_v52 = vsel %vm306_vm3, %v906_v50, 0.0  ;;  %325 = vadd.xlane.f32.xlu0 %v324_v51  ;;  %v320_v57 = vsel %vm156_vm2, %v906_v50, 0.0 }
 0x188   :  { %328 = vadd.xlane.f32.xlu1 %v327_v52  ;;  %v321_v61 = vsel %vm306_vm3, %v320_v57, 0.0 }
 0x189   :  { %v912_v53 = vpop.eup %705 }
 0x18a   :  { %v914_v54 = vpop.eup %707  ;;  %v545_v55 = vsel %vm306_vm3, %v912_v53, 0.0 }
 0x18b   :  { %v548_v56 = vsel %vm306_vm3, %v914_v54, 0.0  ;;  %546 = vadd.xlane.f32.xlu0 %v545_v55  ;;  %v541_v58 = vsel %vm156_vm2, %v914_v54, 0.0  ;;  %v710_v59 = vpop.eup %709 }
 0x18c   :  { %549 = vadd.xlane.f32.xlu1 %v548_v56  ;;  %v712_v60 = vpop.eup %711  ;;  %v542_v62 = vsel %vm306_vm3, %v541_v58, 0.0  ;;  %v58_v63 = vsel %vm51_vm4, %v710_v59, 0.0 }
 0x18d   :  { %v100_v0 = vsel %vm51_vm4, %v712_v60, 0.0 }
 0x18f   :  { %322 = vadd.xlane.f32.xlu0 %v321_v61 }
 0x190   :  { %543 = vadd.xlane.f32.xlu1 %v542_v62 }
 0x193   :  { %59 = vadd.xlane.f32.xlu0 %v58_v63 }
 0x194   :  { %101 = vadd.xlane.f32.xlu1 %v100_v0 }
 0x1a5   :  { %107 = vperm.xlu1 %700, %v93_v3  }
 0x1a9   :  { %67 = vperm.xlu0 %699, %v50_v5  }
 0x210   :  { %v326_v6 = vpop.xlane.xlu0 %325 }
 0x211   :  { %v329_v7 = vpop.xlane.xlu1 %328 }
 0x212   :  { %v330_v10 = vadd.f32 %v329_v7, %v326_v6 }
 0x214   :  { %v547_v8 = vpop.xlane.xlu0 %546 }
 0x215   :  { %v550_v9 = vpop.xlane.xlu1 %549 }
 0x216   :  { %v551_v11 = vadd.f32 %v550_v9, %v547_v8 }
 0x218   :  { %v323_v12 = vpop.xlane.xlu0 %322 }
 0x219   :  { %v544_v13 = vpop.xlane.xlu1 %543  ;;  %v331_v14 = vsub.f32 %v330_v10, %v323_v12 }
 0x21a   :  { %v552_v15 = vsub.f32 %v551_v11, %v544_v13 }
 0x21b   :  { %v332_v16 = vmul.f32 12.0, %v331_v14 }
 0x21c   :  { %v553_v17 = vmul.f32 12.0, %v552_v15  ;;  %v60_v18 = vpop.xlane.xlu0 %59 }
 0x21d   :  { %v333_v19 = vadd.f32 %v332_v16, %v323_v12  ;;  %v102_v20 = vpop.xlane.xlu1 %101  ;;  %713 = vlog2.f32 %v60_v18 }
 0x21e   :  { %v554_v22 = vadd.f32 %v553_v17, %v544_v13  ;;  %715 = vlog2.f32 %v102_v20 }
 0x21f   :  { %717 = vrcp.f32 %v333_v19 }
 0x220   :  { %719 = vrcp.f32 %v554_v22 }
 0x221   :  { %v108_v23 = vpop.permute.xlu1 %107 }
 0x222   :  { %vm109_vm5 = vcmp.eq.s32.totalorder %v866_v4, %v108_v23 }
 0x223   :  { %v110_v27 = vsel %vm109_vm5, %v892_v26, 0.0 }
 0x224   :  { %v68_v24 = vpop.permute.xlu0 %67  ;;  %v111_v29 = vsel %vm51_vm4, %v110_v27, 0.0 }
 0x225   :  { %vm69_vm6 = vcmp.eq.s32.totalorder %v866_v4, %v68_v24 }
 0x226   :  { %v70_v25 = vsel %vm69_vm6, %v882_v21, 0.0 }
 0x227   :  { %v71_v28 = vsel %vm51_vm4, %v70_v25, 0.0 }
 0x228   :  { %72 = vadd.xlane.f32.xlu1 %v71_v28 }
 0x22a   :  { %v714_v30 = vpop.eup %713 }
 0x22b   :  { %v716_v32 = vpop.eup %715  ;;  %v62_v33 = vmul.f32 0.6931472, %v714_v30 }
 0x22c   :  { %v718_v34 = vpop.eup %717  ;;  %v104_v35 = vmul.f32 0.6931472, %v716_v32  ;;  %112 = vadd.xlane.f32.xlu1 %v111_v29 }
 0x22d   :  { %v720_v4 = vpop.eup %719  ;;  %v335_v37 = vmul.f32 %v718_v34, %v333_v19  ;;  %v63_v21 = vadd.f32 %v62_v33, %v896_v36 }
 0x22e   :  { %v556_v26 = vmul.f32 %v720_v4, %v554_v22  ;;  %v105_v38 = vadd.f32 %v104_v35, %v900_v43 }
 0x22f   :  { %v336_v40 = vsub.f32 2.0, %v335_v37  ;;  %v82_v41 = vsel %vm81_vm7, %v63_v21, 0.0 }
 0x230   :  { %v557_v42 = vsub.f32 2.0, %v556_v26  ;;  %83 = vadd.xlane.f32.xlu0 %v82_v41  ;;  %v121_v1 = vsel %vm81_vm7, %v105_v38, 0.0 }
 0x231   :  { %v337_v2 = vmul.f32 %v718_v34, %v336_v40  ;;  %122 = vadd.xlane.f32.xlu1 %v121_v1 }
 0x232   :  { %v558_v44 = vmul.f32 %v720_v4, %v557_v42 }
 0x233   :  { %v338_v46 = vmul.f32 %v337_v2, %v323_v12  ;;  %v339_v47 = vmul.f32 %v904_v49, %v337_v2  ;;  %v342_v36 = vmul.f32 %v906_v50, %v337_v2 }
 0x234   :  { %v559_v48 = vmul.f32 %v558_v44, %v544_v13  ;;  %v560_v43 = vmul.f32 %v912_v53, %v558_v44  ;;  %v563_v51 = vmul.f32 %v914_v54, %v558_v44 }
 0x235   :  { %v358_v52 = vsub.f32 1.0, %v338_v46  ;;  %721 = vlog2.f32 %v338_v46  ;;  %142 = vadd.xlane.f32.xlu1 %v141_v45  ;;  %v340_v55 = vsub.f32 1.0, %v339_v47  ;;  %v343_v56 = vsub.f32 1.0, %v342_v36 }
 0x236   :  { %v579_v57 = vsub.f32 1.0, %v559_v48  ;;  %v561_v58 = vsub.f32 1.0, %v560_v43  ;;  %v564_v59 = vsub.f32 1.0, %v563_v51 }
 0x237   :  { %v359_v60 = vmax.f32 %v358_v52, 1e-30  ;;  %v341_v61 = vmax.f32 %v340_v55, 1e-30  ;;  %v344_v62 = vmax.f32 %v343_v56, 1e-30 }
 0x238   :  { %v562_v63 = vmax.f32 %v561_v58, 1e-30  ;;  %v565_v49 = vmax.f32 %v564_v59, 1e-30  ;;  %v580_v0 = vmax.f32 %v579_v57, 1e-30 }
 0x239   :  { %723 = vlog2.f32 %v359_v60  ;;  %v345_v50 = vmul.f32 %v344_v62, %v341_v61 }
 0x23a   :  { %725 = vlog2.f32 %v559_v48  ;;  %v566_v53 = vmul.f32 %v565_v49, %v562_v63 }
 0x23b   :  { %727 = vlog2.f32 %v345_v50 }
 0x23c   :  { %729 = vlog2.f32 %v566_v53 }
 0x23d   :  { %731 = vlog2.f32 %v580_v0 }
 0x242   :  { %v722_v54 = vpop.eup %721 }
 0x243   :  { %v374_v3 = vmul.f32 0.6931472, %v722_v54 }
 0x245   :  { %v375_v5 = vsel %vm81_vm7, %v374_v3, 0.0 }
 0x246   :  { %v724_v6 = vpop.eup %723  ;;  %376 = vadd.xlane.f32.xlu1 %v375_v5 }
 0x247   :  { %v726_v7 = vpop.eup %725  ;;  %v361_v8 = vmul.f32 0.6931472, %v724_v6 }
 0x248   :  { %v728_v9 = vpop.eup %727  ;;  %v595_v16 = vmul.f32 0.6931472, %v726_v7 }
 0x249   :  { %v730_v10 = vpop.eup %729  ;;  %v362_v11 = vsel %vm81_vm7, %v361_v8, 0.0  ;;  %v347_v12 = vmul.f32 0.6931472, %v728_v9 }
 0x24a   :  { %v732_v13 = vpop.eup %731  ;;  %363 = vadd.xlane.f32.xlu1 %v362_v11  ;;  %v568_v14 = vmul.f32 0.6931472, %v730_v10  ;;  %v596_v19 = vsel %vm81_vm7, %v595_v16, 0.0 }
 0x24b   :  { %v348_v17 = vsel %vm306_vm3, %v347_v12, 0.0  ;;  %v582_v18 = vmul.f32 0.6931472, %v732_v13 }
 0x24c   :  { %v569_v15 = vsel %vm306_vm3, %v568_v14, 0.0 }
 0x24d   :  { %570 = vadd.xlane.f32.xlu0 %v569_v15  ;;  %v583_v20 = vsel %vm81_vm7, %v582_v18, 0.0 }
 0x24e   :  { %349 = vadd.xlane.f32.xlu1 %v348_v17 }
 0x251   :  { %597 = vadd.xlane.f32.xlu0 %v596_v19 }
 0x252   :  { %584 = vadd.xlane.f32.xlu1 %v583_v20 }
 0x2b1   :  { %v73_v22 = vpop.xlane.xlu1 %72 }
 0x2b2   :  { %v74_v23 = vrot.slane %v73_v22, 4 }
 0x2b4   :  { %v75_v24 = vadd.f32 %v74_v23, %v73_v22 }
 0x2b5   :  { %v113_v25 = vpop.xlane.xlu1 %112 }
 0x2b6   :  { %v76_v27 = vrot.slane %v75_v24, 2  ;;  %v114_v28 = vrot.slane %v113_v25, 4 }
 0x2b8   :  { %v115_v29 = vadd.f32 %v114_v28, %v113_v25  ;;  %v77_v30 = vadd.f32 %v76_v27, %v75_v24 }
 0x2b9   :  { %v84_v31 = vpop.xlane.xlu0 %83 }
 0x2ba   :  { %v116_v32 = vrot.slane %v115_v29, 2  ;;  %v123_v33 = vpop.xlane.xlu1 %122  ;;  %v85_v34 = vrot.slane %v84_v31, 4  ;;  %v78_v35 = vrot.slane %v77_v30, 1 }
 0x2bb   :  { %v124_v4 = vrot.slane %v123_v33, 4 }
 0x2bc   :  { %v86_v37 = vadd.f32 %v85_v34, %v84_v31  ;;  %v79_v21 = vadd.f32 %v78_v35, %v77_v30  ;;  %v117_v26 = vadd.f32 %v116_v32, %v115_v29 }
 0x2bd   :  { %v125_v38 = vadd.f32 %v124_v4, %v123_v33 }
 0x2be   :  { %v87_v39 = vrot.slane %v86_v37, 2  ;;  %671 = vpush %v79_v21  ;;  %v143_v40 = vpop.xlane.xlu1 %142  ;;  %v118_v1 = vrot.slane %v117_v26, 1 }
 0x2bf   :  { %v126_v41 = vrot.slane %v125_v38, 2  ;;  %v144_v42 = vrot.slane %v143_v40, 4 }
 0x2c0   :  { %v88_v2 = vadd.f32 %v87_v39, %v86_v37  ;;  %v119_v36 = vadd.f32 %v118_v1, %v117_v26 }
 0x2c1   :  { %v145_v44 = vadd.f32 %v144_v42, %v143_v40  ;;  %v127_v45 = vadd.f32 %v126_v41, %v125_v38 }
 0x2c2   :  { %v89_v46 = vrot.slane %v88_v2, 1 }
 0x2c3   :  { %v146_v47 = vrot.slane %v145_v44, 2  ;;  %v128_v48 = vrot.slane %v127_v45, 1 }
 0x2c4   :  { %v90_v43 = vadd.f32 %v89_v46, %v88_v2 }
 0x2c5   :  { %v129_v51 = vadd.f32 %v128_v48, %v127_v45  ;;  %v147_v52 = vadd.f32 %v146_v47, %v145_v44 }
 0x2c6   :  { %673 = vpush %v90_v43 }
 0x2c7   :  { %675 = vpush %v119_v36  ;;  %v148_v55 = vrot.slane %v147_v52, 1 }
 0x2c8   :  { %677 = vpush %v129_v51 }
 0x2c9   :  { %v149_v56 = vadd.f32 %v148_v55, %v147_v52 }
 0x2cb   :  { %679 = vpush %v149_v56 }
 0x2cf   :  { %v377_v57 = vpop.xlane.xlu1 %376 }
 0x2d0   :  { %v378_v58 = vrot.slane %v377_v57, 4 }
 0x2d2   :  { %v379_v60 = vadd.f32 %v378_v58, %v377_v57 }
 0x2d3   :  { %v364_v59 = vpop.xlane.xlu1 %363 }
 0x2d4   :  { %v365_v61 = vrot.slane %v364_v59, 4  ;;  %v380_v50 = vrot.slane %v379_v60, 2 }
 0x2d6   :  { %v366_v62 = vadd.f32 %v365_v61, %v364_v59  ;;  %v571_v63 = vpop.xlane.xlu0 %570  ;;  %v381_v13 = vadd.f32 %v380_v50, %v379_v60 }
 0x2d7   :  { %v572_v49 = vrot.slane %v571_v63, 4  ;;  %v350_v0 = vpop.xlane.xlu1 %349 }
 0x2d8   :  { %v367_v53 = vrot.slane %v366_v62, 2  ;;  %v351_v54 = vrot.slane %v350_v0, 4  ;;  %v382_v23 = vrot.slane %v381_v13, 1 }
 0x2d9   :  { %v573_v3 = vadd.f32 %v572_v49, %v571_v63 }
 0x2da   :  { %v352_v5 = vadd.f32 %v351_v54, %v350_v0  ;;  %v598_v6 = vpop.xlane.xlu0 %597  ;;  %v368_v10 = vadd.f32 %v367_v53, %v366_v62  ;;  %v383_v31 = vadd.f32 %v382_v23, %v381_v13 }
 0x2db   :  { %v574_v7 = vrot.slane %v573_v3, 2  ;;  %v599_v8 = vrot.slane %v598_v6, 4  ;;  %v585_v9 = vpop.xlane.xlu1 %584 }
 0x2dc   :  { %v353_v11 = vrot.slane %v352_v5, 2  ;;  %v586_v12 = vrot.slane %v585_v9, 4  ;;  %v369_v19 = vrot.slane %v368_v10, 1 }
 0x2dd   :  { %v600_v14 = vadd.f32 %v599_v8, %v598_v6  ;;  %v575_v15 = vadd.f32 %v574_v7, %v573_v3 }
 0x2de   :  { %v587_v16 = vadd.f32 %v586_v12, %v585_v9  ;;  %v354_v17 = vadd.f32 %v353_v11, %v352_v5  ;;  %v370_v29 = vadd.f32 %v369_v19, %v368_v10 }
 0x2df   :  { %v601_v18 = vrot.slane %v600_v14, 2  ;;  %v576_v25 = vrot.slane %v575_v15, 1 }
 0x2e0   :  { %v588_v20 = vrot.slane %v587_v16, 2  ;;  %v355_v22 = vrot.slane %v354_v17, 1 }
 0x2e1   :  { %v602_v24 = vadd.f32 %v601_v18, %v600_v14  ;;  %v577_v33 = vadd.f32 %v576_v25, %v575_v15 }
 0x2e2   :  { %v589_v27 = vadd.f32 %v588_v20, %v587_v16  ;;  %v356_v28 = vadd.f32 %v355_v22, %v354_v17 }
 0x2e3   :  { %v603_v30 = vrot.slane %v602_v24, 1 }
 0x2e4   :  { %681 = vpush %v356_v28  ;;  %v590_v32 = vrot.slane %v589_v27, 1 }
 0x2e5   :  { %683 = vpush %v370_v29  ;;  %v604_v35 = vadd.f32 %v603_v30, %v602_v24 }
 0x2e6   :  { %685 = vpush %v383_v31  ;;  %v591_v34 = vadd.f32 %v590_v32, %v589_v27 }
 0x2e7   :  { %687 = vpush %v577_v33 }
 0x2e8   :  { %689 = vpush %v591_v34 }
 0x2e9   :  { %691 = vpush %v604_v35 }
 0x2ef   :  { %s672_s4 = spop %671 }
 0x2f7   :  { %s674_s5 = spop %673 }
 0x2f8   :  { %s676_s11 = spop %675  ;;  %s92_s21 = ssub.f32 %s674_s5, %s672_s4 }
 0x2f9   :  { %s678_s12 = spop %677  ;;  %s777_s4 = scalar_lea.vmem %s626_s8, 32 }
 0x2fa   :  { %s131_s24 = ssub.f32 %s678_s12, %s676_s11  ;;  %p779_p12 = scmp.lt.s32.totalorder %s777_s4, %s773_s10 }
 0x2fc   :  { %s680_s13 = spop %679  ;;  %s132_s28 = sadd.f32 %s131_s24, %s92_s21 }
 0x2fd   :  { %s153_s0 = smul.f32 0.00390625, %s680_s13  ;;  %p780_p13 = por %p779_p12, %p778_p11 }
 0x2fe   :  { %s135_s2 = smul.f32 0.125, %s132_s28 }
 0x2ff   :  { %p781_p0 = pnand %p780_p13, %p774_p10 }
 0x315   :  { %s682_s14 = spop %681 }
 0x316   :  { %s684_s15 = spop %683 }
 0x317   :  { %s686_s16 = spop %685  ;;  %s372_s18 = ssub.f32 %s682_s14, %s684_s15 }
 0x318   :  { %s688_s17 = spop %687 }
 0x319   :  { %s690_s19 = spop %689 }
 0x31a   :  { %s593_s20 = ssub.f32 %s688_s17, %s690_s19  ;;  %s692_s22 = spop %691 }
 0x31b   :  { %s606_s26 = sadd.f32 %s692_s22, %s686_s16 }
 0x31c   :  { %s607_s23 = sadd.f32 %s593_s20, %s372_s18 }
 0x31e   :  { %s608_s25 = smul.f32 12.0, %s607_s23 }
 0x320   :  { %s609_s27 = sadd.f32 %s608_s25, %s606_s26 }
 0x322   :  { %s610_s29 = ssub.f32 0.0, %s609_s27 }
 0x324   :  { %s613_s30 = smul.f32 0.0625, %s610_s29 }
 0x326   :  { %s614_s3 = smul.f32 0.03, %s613_s30 }
 0x328   :  { %s615_s1 = sadd.f32 %s614_s3, %s135_s2 }
 0x32a   :  { %s616_s9 = sadd.f32 %s615_s1, %s153_s0 }
 0x32c   :  { %v617_v4 = vstv %s616_s9 }
 0x32d   :  { %618 = vst [vmem:[#allocation7] sm:$0x1] %v617_v4 }
 0x32e   :  { %784 = shalt.err (!%p781_p0)
}
 0x32f   :  { %628 = dma.vmem_to_hbm [thread:$0]  %s626_s8, 16, %s970_s6, [#allocation4]  }
 0x330   :  { %797 = dma.done.wait [#allocation4], 16  }
 0x331   :  { %798 = vsyncadd [#allocation4], 4294967280 }
 0x332   :  { %632 = vsyncpa [#allocation3], 1 }
 0x333   :  { %633 = vsyncpa [#allocation6], 1 }
 0x334   :  { %634 = vsyncpa [#allocation4], 1 }

</bundles_post_ra>
